<compile_context>
chip_gen: v5e
topology: v5e:2x2
jax: 0.10.0
libtpu: 0.0.40
codegen_flags: <defaults>
</compile_context>

<pallas_src>
import functools

import jax
import jax.numpy as jnp
from jax.experimental import pallas as pl
from jax.experimental.pallas import tpu as pltpu


def _round_up(n, m):
    return ((n + m - 1) // m) * m


def _pick_chunk(seq_len, max_chunk=128):
    """Largest divisor of seq_len that is <= max_chunk (>= 1 always)."""
    for c in range(min(seq_len, max_chunk), 0, -1):
        if seq_len % c == 0:
            return c
    return seq_len


def _lstm_chunk_kernel(x_ref, wih_ref, whh_ref, bias_ref, wlin_ref, blin_ref,
                       out_ref, hlast_ref,
                       pre_sc, hseq_sc, h_sc, c_sc,
                       *, t_chunk, b_pad, hidden):
    c_idx = pl.program_id(0)

    # Initialize the recurrent state once, at the first chunk.
    @pl.when(c_idx == 0)
    def _():
        h_sc[...] = jnp.zeros_like(h_sc)
        c_sc[...] = jnp.zeros_like(c_sc)

    # (1) Batched, time-independent input projection for the whole chunk:
    #     pre_gates = x @ W_ih^T + (b_ih + b_hh)          -> (T*Bp, 4H)
    pre_sc[...] = (
        jnp.dot(x_ref[...], wih_ref[...], preferred_element_type=jnp.float32)
        + bias_ref[...]
    )

    # Weights resident in vregs/VMEM for the whole chunk loop.
    whh = whh_ref[...]              # (H, 4H)
    h0 = h_sc[...]                  # (Bp, H)
    c0 = c_sc[...]                  # (Bp, H)

    # (2) Serial recurrence over the chunk. Only h_prev @ W_hh^T + elementwise
    #     cell update happens per step.
    def step(t, carry):
        h_prev, c_prev = carry
        row = pl.multiple_of(t * b_pad, 8)                  # 8-aligned sublane offset
        gates = pre_sc[pl.ds(row, b_pad), :] + jnp.dot(
            h_prev, whh, preferred_element_type=jnp.float32)  # (Bp, 4H)

        # PyTorch gate order: input, forget, cell(g), output.
        i_g = jax.nn.sigmoid(gates[:, 0 * hidden:1 * hidden])
        f_g = jax.nn.sigmoid(gates[:, 1 * hidden:2 * hidden])
        g_g = jnp.tanh(gates[:, 2 * hidden:3 * hidden])
        o_g = jax.nn.sigmoid(gates[:, 3 * hidden:4 * hidden])

        c_new = f_g * c_prev + i_g * g_g
        h_new = o_g * jnp.tanh(c_new)

        hseq_sc[pl.ds(row, b_pad), :] = h_new               # stage h_t for the projection
        return (h_new, c_new)

    unroll = True if t_chunk <= 32 else 8
    h_fin, c_fin = jax.lax.fori_loop(0, t_chunk, step, (h0, c0), unroll=unroll)

    # Persist the state for the next chunk.
    h_sc[...] = h_fin
    c_sc[...] = c_fin

    # (3) Batched output Linear for the whole chunk: (T*Bp, H) @ (H, L) + b.
    out_ref[...] = (
        jnp.dot(hseq_sc[...], wlin_ref[...], preferred_element_type=jnp.float32)
        + blin_ref[...]
    )

    # Final hidden state: only the last chunk's write matters.
    @pl.when(c_idx == pl.num_programs(0) - 1)
    def _():
        hlast_ref[...] = h_fin


@functools.partial(jax.jit, static_argnames=())
def _lstm_encoder_forward_batched(x, params):
    """x: (batch, seq_len, input_size), batch_first like PyTorch.

    Returns (out, h): out (batch, seq_len, latent), h (batch, hidden).
    """
    w_ih, w_hh, b_ih, b_hh, w_lin, b_lin = params
    batch, seq_len, input_size = x.shape
    hidden = w_hh.shape[1]
    latent = w_lin.shape[0]

    b_pad = _round_up(batch, 8)                 # sublane-aligned batch tile
    t_chunk = _pick_chunk(seq_len, 128)         # timesteps per grid step
    n_chunks = seq_len // t_chunk
    rows = t_chunk * b_pad                      # rows of the flattened chunk

    # Time-major, batch-padded, flattened to 2-D so every ref in the kernel is 2-D.
    x_tm = jnp.transpose(x, (1, 0, 2)).astype(jnp.float32)          # (S, B, I)
    x_tm = jnp.pad(x_tm, ((0, 0), (0, b_pad - batch), (0, 0)))      # (S, Bp, I)
    x_flat = x_tm.reshape(seq_len * b_pad, input_size)              # (S*Bp, I)

    # Pre-transposed weights so the kernel does plain (M,K)@(K,N) matmuls;
    # the two LSTM biases are pre-added into a single operand.
    w_ih_t = jnp.transpose(w_ih).astype(jnp.float32)                # (I, 4H)
    w_hh_t = jnp.transpose(w_hh).astype(jnp.float32)                # (H, 4H)
    bias = (b_ih + b_hh).reshape(1, -1).astype(jnp.float32)         # (1, 4H)
    w_lin_t = jnp.transpose(w_lin).astype(jnp.float32)              # (H, L)
    b_lin_2d = b_lin.reshape(1, -1).astype(jnp.float32)             # (1, L)

    full = lambda shape: pl.BlockSpec(shape, lambda c: (0,) * len(shape))

    kernel = functools.partial(_lstm_chunk_kernel,
                               t_chunk=t_chunk, b_pad=b_pad, hidden=hidden)

    out_flat, h_last = pl.pallas_call(
        kernel,
        out_shape=(
            jax.ShapeDtypeStruct((seq_len * b_pad, latent), jnp.float32),
            jax.ShapeDtypeStruct((b_pad, hidden), jnp.float32),
        ),
        grid_spec=pltpu.PrefetchScalarGridSpec(
            num_scalar_prefetch=0,
            grid=(n_chunks,),
            in_specs=[
                pl.BlockSpec((rows, input_size), lambda c: (c, 0)),   # x chunk (flat)
                full((input_size, 4 * hidden)),                       # W_ih^T
                full((hidden, 4 * hidden)),                           # W_hh^T
                full((1, 4 * hidden)),                                # b_ih + b_hh
                full((hidden, latent)),                               # W_lin^T
                full((1, latent)),                                    # b_lin
            ],
            out_specs=(
                pl.BlockSpec((rows, latent), lambda c: (c, 0)),       # out chunk (flat)
                full((b_pad, hidden)),                                # final h
            ),
            scratch_shapes=[
                pltpu.VMEM((rows, 4 * hidden), jnp.float32),   # pre-gates for the chunk
                pltpu.VMEM((rows, hidden), jnp.float32),       # staged h_t slab
                pltpu.VMEM((b_pad, hidden), jnp.float32),      # h state
                pltpu.VMEM((b_pad, hidden), jnp.float32),      # c state
            ],
        ),
        compiler_params=pltpu.CompilerParams(
            dimension_semantics=("arbitrary",)),   # sequential time recurrence
    )(x_flat, w_ih_t, w_hh_t, bias, w_lin_t, b_lin_2d)

    out = out_flat.reshape(seq_len, b_pad, latent)[:, :batch, :]     # (S, B, L)
    out = jnp.transpose(out, (1, 0, 2))                              # (B, S, L)
    return out, h_last[:batch]


def lstm_encoder_forward(x, params):
    """Matches LSTMEncoder.forward: accepts (B, S, F) or (S, F)."""
    if x.ndim == 2:
        out, h = _lstm_encoder_forward_batched(x[None], params)
        return out[0], h[0]
    return _lstm_encoder_forward_batched(x, params)


def init_params(key, input_size, hidden_size, latent_size):
    """Deterministic synthetic parameters, same shapes as the PyTorch module
    (num_lstm_layers=1)."""
    ks = jax.random.split(key, 6)
    k = 1.0 / jnp.sqrt(hidden_size)
    w_ih = jax.random.uniform(ks[0], (4 * hidden_size, input_size), jnp.float32, -k, k)
    w_hh = jax.random.uniform(ks[1], (4 * hidden_size, hidden_size), jnp.float32, -k, k)
    b_ih = jax.random.uniform(ks[2], (4 * hidden_size,), jnp.float32, -k, k)
    b_hh = jax.random.uniform(ks[3], (4 * hidden_size,), jnp.float32, -k, k)
    kl = 1.0 / jnp.sqrt(hidden_size)
    w_lin = jax.random.uniform(ks[4], (latent_size, hidden_size), jnp.float32, -kl, kl)
    b_lin = jax.random.uniform(ks[5], (latent_size,), jnp.float32, -kl, kl)
    return (w_ih, w_hh, b_ih, b_hh, w_lin, b_lin)


def reference_forward(x, params):
    """Pure-JAX reference matching PyTorch nn.LSTM(batch_first) + nn.Linear."""
    w_ih, w_hh, b_ih, b_hh, w_lin, b_lin = params
    hidden = w_hh.shape[1]
    batch = x.shape[0]

    def step(carry, x_t):
        h, c = carry
        gates = x_t @ w_ih.T + b_ih + h @ w_hh.T + b_hh
        i = jax.nn.sigmoid(gates[:, 0 * hidden:1 * hidden])
        f = jax.nn.sigmoid(gates[:, 1 * hidden:2 * hidden])
        g = jnp.tanh(gates[:, 2 * hidden:3 * hidden])
        o = jax.nn.sigmoid(gates[:, 3 * hidden:4 * hidden])
        c = f * c + i * g
        h = o * jnp.tanh(c)
        return (h, c), h

    h0 = jnp.zeros((batch, hidden), jnp.float32)
    c0 = jnp.zeros((batch, hidden), jnp.float32)
    (h_last, _), hs = jax.lax.scan(step, (h0, c0), jnp.transpose(x, (1, 0, 2)))
    out = jnp.transpose(hs, (1, 0, 2)) @ w_lin.T + b_lin
    return out, h_last


if __name__ == "__main__":
    # Small shapes consistent with the module's forward.
    batch, seq_len = 2, 8
    input_size, hidden_size, latent_size = 16, 32, 8

    key = jax.random.PRNGKey(0)
    kx, kp = jax.random.split(key)
    x = jax.random.normal(kx, (batch, seq_len, input_size), jnp.float32)
    params = init_params(kp, input_size, hidden_size, latent_size)

    out, h = lstm_encoder_forward(x, params)
    out, h = jax.block_until_ready((out, h))

    out_ref, h_ref = reference_forward(x, params)
    assert out.shape == (batch, seq_len, latent_size)
    assert h.shape == (batch, hidden_size)
    assert jnp.allclose(out, out_ref, atol=1e-4, rtol=1e-4)
    assert jnp.allclose(h, h_ref, atol=1e-4, rtol=1e-4)

    print("KERNEL_OK")
</pallas_src>

<mosaic_0001>
module attributes {stable_mosaic.version = 11 : i64} {
  func.func @_lstm_chunk_kernel(%arg0: i32, %arg1: memref<64x16xf32, #tpu.memory_space<vmem>>, %arg2: memref<16x128xf32, #tpu.memory_space<vmem>>, %arg3: memref<32x128xf32, #tpu.memory_space<vmem>>, %arg4: memref<1x128xf32, #tpu.memory_space<vmem>>, %arg5: memref<32x8xf32, #tpu.memory_space<vmem>>, %arg6: memref<1x8xf32, #tpu.memory_space<vmem>>, %arg7: memref<64x8xf32, #tpu.memory_space<vmem>>, %arg8: memref<8x32xf32, #tpu.memory_space<vmem>>, %arg9: memref<64x128xf32, #tpu.memory_space<vmem>>, %arg10: memref<64x32xf32, #tpu.memory_space<vmem>>, %arg11: memref<8x32xf32, #tpu.memory_space<vmem>>, %arg12: memref<8x32xf32, #tpu.memory_space<vmem>>) attributes {dimension_semantics = [#tpu.dimension_semantics<arbitrary>], iteration_bounds = array<i64: 1>, scalar_prefetch = 0 : i64, scratch_operands = 4 : i64, tpu.core_type = #tpu.core_type<tc>, window_params = [{transform_indices = @transform_0, window_bounds = array<i64: 64, 16>}, {pipeline_mode = #tpu.pipeline_mode<synchronous>, transform_indices = @transform_1, window_bounds = array<i64: 16, 128>}, {pipeline_mode = #tpu.pipeline_mode<synchronous>, transform_indices = @transform_2, window_bounds = array<i64: 32, 128>}, {pipeline_mode = #tpu.pipeline_mode<synchronous>, transform_indices = @transform_3, window_bounds = array<i64: 1, 128>}, {pipeline_mode = #tpu.pipeline_mode<synchronous>, transform_indices = @transform_4, window_bounds = array<i64: 32, 8>}, {pipeline_mode = #tpu.pipeline_mode<synchronous>, transform_indices = @transform_5, window_bounds = array<i64: 1, 8>}, {transform_indices = @transform_6, window_bounds = array<i64: 64, 8>}, {pipeline_mode = #tpu.pipeline_mode<synchronous>, transform_indices = @transform_7, window_bounds = array<i64: 8, 32>}]} {
    %c0_i32 = arith.constant 0 : i32
    %0 = arith.cmpi eq, %arg0, %c0_i32 : i32
    %1 = arith.extui %0 : i1 to i32
    %c0_i32_0 = arith.constant 0 : i32
    %2 = arith.cmpi ne, %1, %c0_i32_0 : i32
    scf.if %2 {
      %cst_86 = arith.constant 0.000000e+00 : f32
      %289 = vector.broadcast %cst_86 : f32 to vector<8x32xf32>
      %c0_87 = arith.constant 0 : index
      %c0_88 = arith.constant 0 : index
      %290 = vector.load %arg11[%c0_87, %c0_88] : memref<8x32xf32, #tpu.memory_space<vmem>>, vector<8x32xf32>
      tpu.vector_store %arg11[%c0_87, %c0_88], %289 {strides = array<i32>} : memref<8x32xf32, #tpu.memory_space<vmem>>, vector<8x32xf32>,
      %cst_89 = arith.constant 0.000000e+00 : f32
      %291 = vector.broadcast %cst_89 : f32 to vector<8x32xf32>
      %c0_90 = arith.constant 0 : index
      %c0_91 = arith.constant 0 : index
      %292 = vector.load %arg12[%c0_90, %c0_91] : memref<8x32xf32, #tpu.memory_space<vmem>>, vector<8x32xf32>
      tpu.vector_store %arg12[%c0_90, %c0_91], %291 {strides = array<i32>} : memref<8x32xf32, #tpu.memory_space<vmem>>, vector<8x32xf32>,
    } else {
    }
    %c0 = arith.constant 0 : index
    %c0_1 = arith.constant 0 : index
    %3 = vector.load %arg1[%c0, %c0_1] : memref<64x16xf32, #tpu.memory_space<vmem>>, vector<64x16xf32>
    %c0_2 = arith.constant 0 : index
    %c0_3 = arith.constant 0 : index
    %4 = vector.load %arg2[%c0_2, %c0_3] : memref<16x128xf32, #tpu.memory_space<vmem>>, vector<16x128xf32>
    %cst = arith.constant dense<0.000000e+00> : vector<64x128xf32>
    %5 = tpu.matmul %3, %4, %cst {dimension_numbers = #tpu.dot_dimension_numbers<[1], [0], [0], [1], [0, 0, 1, 1], [], []>} : vector<64x16xf32>, vector<16x128xf32>, vector<64x128xf32> -> vector<64x128xf32>
    %c0_4 = arith.constant 0 : index
    %c0_5 = arith.constant 0 : index
    %6 = vector.load %arg4[%c0_4, %c0_5] : memref<1x128xf32, #tpu.memory_space<vmem>>, vector<1x128xf32>
    %7 = vector.broadcast %6 : vector<1x128xf32> to vector<64x128xf32>
    %8 = arith.addf %5, %7 : vector<64x128xf32>
    %c0_6 = arith.constant 0 : index
    %c0_7 = arith.constant 0 : index
    %9 = vector.load %arg9[%c0_6, %c0_7] : memref<64x128xf32, #tpu.memory_space<vmem>>, vector<64x128xf32>
    tpu.vector_store %arg9[%c0_6, %c0_7], %8 {strides = array<i32>} : memref<64x128xf32, #tpu.memory_space<vmem>>, vector<64x128xf32>,
    %c0_8 = arith.constant 0 : index
    %c0_9 = arith.constant 0 : index
    %10 = vector.load %arg3[%c0_8, %c0_9] : memref<32x128xf32, #tpu.memory_space<vmem>>, vector<32x128xf32>
    %c0_10 = arith.constant 0 : index
    %c0_11 = arith.constant 0 : index
    %11 = vector.load %arg11[%c0_10, %c0_11] : memref<8x32xf32, #tpu.memory_space<vmem>>, vector<8x32xf32>
    %c0_12 = arith.constant 0 : index
    %c0_13 = arith.constant 0 : index
    %12 = vector.load %arg12[%c0_12, %c0_13] : memref<8x32xf32, #tpu.memory_space<vmem>>, vector<8x32xf32>
    %c0_i32_14 = arith.constant 0 : i32
    %c8_i32 = arith.constant 8 : i32
    %13 = arith.muli %c0_i32_14, %c8_i32 : i32
    %14 = tpu.assume_multiple %13, 8 : i32
    %15 = arith.index_cast %14 : i32 to index
    %c0_15 = arith.constant 0 : index
    %16 = vector.load %arg9[%15, %c0_15] : memref<64x128xf32, #tpu.memory_space<vmem>>, vector<8x128xf32>
    %cst_16 = arith.constant dense<0.000000e+00> : vector<8x128xf32>
    %17 = tpu.matmul %11, %10, %cst_16 {dimension_numbers = #tpu.dot_dimension_numbers<[1], [0], [0], [1], [0, 0, 1, 1], [], []>} : vector<8x32xf32>, vector<32x128xf32>, vector<8x128xf32> -> vector<8x128xf32>
    %18 = arith.addf %16, %17 : vector<8x128xf32>
    %19 = vector.extract_strided_slice %18 {offsets = [0, 0], sizes = [8, 32], strides = [1, 1]} : vector<8x128xf32> to vector<8x32xf32>
    %20 = arith.negf %19 : vector<8x32xf32>
    %21 = math.exp %20 : vector<8x32xf32>
    %cst_17 = arith.constant 1.000000e+00 : f32
    %22 = vector.broadcast %cst_17 : f32 to vector<8x32xf32>
    %23 = arith.addf %22, %21 : vector<8x32xf32>
    %24 = arith.divf %22, %23 : vector<8x32xf32>
    %25 = vector.extract_strided_slice %18 {offsets = [0, 32], sizes = [8, 32], strides = [1, 1]} : vector<8x128xf32> to vector<8x32xf32>
    %26 = arith.negf %25 : vector<8x32xf32>
    %27 = math.exp %26 : vector<8x32xf32>
    %cst_18 = arith.constant 1.000000e+00 : f32
    %28 = vector.broadcast %cst_18 : f32 to vector<8x32xf32>
    %29 = arith.addf %28, %27 : vector<8x32xf32>
    %30 = arith.divf %28, %29 : vector<8x32xf32>
    %31 = vector.extract_strided_slice %18 {offsets = [0, 64], sizes = [8, 32], strides = [1, 1]} : vector<8x128xf32> to vector<8x32xf32>
    %32 = math.tanh %31 : vector<8x32xf32>
    %33 = vector.extract_strided_slice %18 {offsets = [0, 96], sizes = [8, 32], strides = [1, 1]} : vector<8x128xf32> to vector<8x32xf32>
    %34 = arith.negf %33 : vector<8x32xf32>
    %35 = math.exp %34 : vector<8x32xf32>
    %cst_19 = arith.constant 1.000000e+00 : f32
    %36 = vector.broadcast %cst_19 : f32 to vector<8x32xf32>
    %37 = arith.addf %36, %35 : vector<8x32xf32>
    %38 = arith.divf %36, %37 : vector<8x32xf32>
    %39 = arith.mulf %30, %12 : vector<8x32xf32>
    %40 = arith.mulf %24, %32 : vector<8x32xf32>
    %41 = arith.addf %39, %40 : vector<8x32xf32>
    %42 = math.tanh %41 : vector<8x32xf32>
    %43 = arith.mulf %38, %42 : vector<8x32xf32>
    %44 = arith.index_cast %14 : i32 to index
    %c0_20 = arith.constant 0 : index
    %45 = vector.load %arg10[%44, %c0_20] : memref<64x32xf32, #tpu.memory_space<vmem>>, vector<8x32xf32>
    tpu.vector_store %arg10[%44, %c0_20], %43 {strides = array<i32>} : memref<64x32xf32, #tpu.memory_space<vmem>>, vector<8x32xf32>,
    %c1_i32 = arith.constant 1 : i32
    %c8_i32_21 = arith.constant 8 : i32
    %46 = arith.muli %c1_i32, %c8_i32_21 : i32
    %47 = tpu.assume_multiple %46, 8 : i32
    %48 = arith.index_cast %47 : i32 to index
    %c0_22 = arith.constant 0 : index
    %49 = vector.load %arg9[%48, %c0_22] : memref<64x128xf32, #tpu.memory_space<vmem>>, vector<8x128xf32>
    %cst_23 = arith.constant dense<0.000000e+00> : vector<8x128xf32>
    %50 = tpu.matmul %43, %10, %cst_23 {dimension_numbers = #tpu.dot_dimension_numbers<[1], [0], [0], [1], [0, 0, 1, 1], [], []>} : vector<8x32xf32>, vector<32x128xf32>, vector<8x128xf32> -> vector<8x128xf32>
    %51 = arith.addf %49, %50 : vector<8x128xf32>
    %52 = vector.extract_strided_slice %51 {offsets = [0, 0], sizes = [8, 32], strides = [1, 1]} : vector<8x128xf32> to vector<8x32xf32>
    %53 = arith.negf %52 : vector<8x32xf32>
    %54 = math.exp %53 : vector<8x32xf32>
    %cst_24 = arith.constant 1.000000e+00 : f32
    %55 = vector.broadcast %cst_24 : f32 to vector<8x32xf32>
    %56 = arith.addf %55, %54 : vector<8x32xf32>
    %57 = arith.divf %55, %56 : vector<8x32xf32>
    %58 = vector.extract_strided_slice %51 {offsets = [0, 32], sizes = [8, 32], strides = [1, 1]} : vector<8x128xf32> to vector<8x32xf32>
    %59 = arith.negf %58 : vector<8x32xf32>
    %60 = math.exp %59 : vector<8x32xf32>
    %cst_25 = arith.constant 1.000000e+00 : f32
    %61 = vector.broadcast %cst_25 : f32 to vector<8x32xf32>
    %62 = arith.addf %61, %60 : vector<8x32xf32>
    %63 = arith.divf %61, %62 : vector<8x32xf32>
    %64 = vector.extract_strided_slice %51 {offsets = [0, 64], sizes = [8, 32], strides = [1, 1]} : vector<8x128xf32> to vector<8x32xf32>
    %65 = math.tanh %64 : vector<8x32xf32>
    %66 = vector.extract_strided_slice %51 {offsets = [0, 96], sizes = [8, 32], strides = [1, 1]} : vector<8x128xf32> to vector<8x32xf32>
    %67 = arith.negf %66 : vector<8x32xf32>
    %68 = math.exp %67 : vector<8x32xf32>
    %cst_26 = arith.constant 1.000000e+00 : f32
    %69 = vector.broadcast %cst_26 : f32 to vector<8x32xf32>
    %70 = arith.addf %69, %68 : vector<8x32xf32>
    %71 = arith.divf %69, %70 : vector<8x32xf32>
    %72 = arith.mulf %63, %41 : vector<8x32xf32>
    %73 = arith.mulf %57, %65 : vector<8x32xf32>
    %74 = arith.addf %72, %73 : vector<8x32xf32>
    %75 = math.tanh %74 : vector<8x32xf32>
    %76 = arith.mulf %71, %75 : vector<8x32xf32>
    %77 = arith.index_cast %47 : i32 to index
    %c0_27 = arith.constant 0 : index
    %78 = vector.load %arg10[%77, %c0_27] : memref<64x32xf32, #tpu.memory_space<vmem>>, vector<8x32xf32>
    tpu.vector_store %arg10[%77, %c0_27], %76 {strides = array<i32>} : memref<64x32xf32, #tpu.memory_space<vmem>>, vector<8x32xf32>,
    %c2_i32 = arith.constant 2 : i32
    %c8_i32_28 = arith.constant 8 : i32
    %79 = arith.muli %c2_i32, %c8_i32_28 : i32
    %80 = tpu.assume_multiple %79, 8 : i32
    %81 = arith.index_cast %80 : i32 to index
    %c0_29 = arith.constant 0 : index
    %82 = vector.load %arg9[%81, %c0_29] : memref<64x128xf32, #tpu.memory_space<vmem>>, vector<8x128xf32>
    %cst_30 = arith.constant dense<0.000000e+00> : vector<8x128xf32>
    %83 = tpu.matmul %76, %10, %cst_30 {dimension_numbers = #tpu.dot_dimension_numbers<[1], [0], [0], [1], [0, 0, 1, 1], [], []>} : vector<8x32xf32>, vector<32x128xf32>, vector<8x128xf32> -> vector<8x128xf32>
    %84 = arith.addf %82, %83 : vector<8x128xf32>
    %85 = vector.extract_strided_slice %84 {offsets = [0, 0], sizes = [8, 32], strides = [1, 1]} : vector<8x128xf32> to vector<8x32xf32>
    %86 = arith.negf %85 : vector<8x32xf32>
    %87 = math.exp %86 : vector<8x32xf32>
    %cst_31 = arith.constant 1.000000e+00 : f32
    %88 = vector.broadcast %cst_31 : f32 to vector<8x32xf32>
    %89 = arith.addf %88, %87 : vector<8x32xf32>
    %90 = arith.divf %88, %89 : vector<8x32xf32>
    %91 = vector.extract_strided_slice %84 {offsets = [0, 32], sizes = [8, 32], strides = [1, 1]} : vector<8x128xf32> to vector<8x32xf32>
    %92 = arith.negf %91 : vector<8x32xf32>
    %93 = math.exp %92 : vector<8x32xf32>
    %cst_32 = arith.constant 1.000000e+00 : f32
    %94 = vector.broadcast %cst_32 : f32 to vector<8x32xf32>
    %95 = arith.addf %94, %93 : vector<8x32xf32>
    %96 = arith.divf %94, %95 : vector<8x32xf32>
    %97 = vector.extract_strided_slice %84 {offsets = [0, 64], sizes = [8, 32], strides = [1, 1]} : vector<8x128xf32> to vector<8x32xf32>
    %98 = math.tanh %97 : vector<8x32xf32>
    %99 = vector.extract_strided_slice %84 {offsets = [0, 96], sizes = [8, 32], strides = [1, 1]} : vector<8x128xf32> to vector<8x32xf32>
    %100 = arith.negf %99 : vector<8x32xf32>
    %101 = math.exp %100 : vector<8x32xf32>
    %cst_33 = arith.constant 1.000000e+00 : f32
    %102 = vector.broadcast %cst_33 : f32 to vector<8x32xf32>
    %103 = arith.addf %102, %101 : vector<8x32xf32>
    %104 = arith.divf %102, %103 : vector<8x32xf32>
    %105 = arith.mulf %96, %74 : vector<8x32xf32>
    %106 = arith.mulf %90, %98 : vector<8x32xf32>
    %107 = arith.addf %105, %106 : vector<8x32xf32>
    %108 = math.tanh %107 : vector<8x32xf32>
    %109 = arith.mulf %104, %108 : vector<8x32xf32>
    %110 = arith.index_cast %80 : i32 to index
    %c0_34 = arith.constant 0 : index
    %111 = vector.load %arg10[%110, %c0_34] : memref<64x32xf32, #tpu.memory_space<vmem>>, vector<8x32xf32>
    tpu.vector_store %arg10[%110, %c0_34], %109 {strides = array<i32>} : memref<64x32xf32, #tpu.memory_space<vmem>>, vector<8x32xf32>,
    %c3_i32 = arith.constant 3 : i32
    %c8_i32_35 = arith.constant 8 : i32
    %112 = arith.muli %c3_i32, %c8_i32_35 : i32
    %113 = tpu.assume_multiple %112, 8 : i32
    %114 = arith.index_cast %113 : i32 to index
    %c0_36 = arith.constant 0 : index
    %115 = vector.load %arg9[%114, %c0_36] : memref<64x128xf32, #tpu.memory_space<vmem>>, vector<8x128xf32>
    %cst_37 = arith.constant dense<0.000000e+00> : vector<8x128xf32>
    %116 = tpu.matmul %109, %10, %cst_37 {dimension_numbers = #tpu.dot_dimension_numbers<[1], [0], [0], [1], [0, 0, 1, 1], [], []>} : vector<8x32xf32>, vector<32x128xf32>, vector<8x128xf32> -> vector<8x128xf32>
    %117 = arith.addf %115, %116 : vector<8x128xf32>
    %118 = vector.extract_strided_slice %117 {offsets = [0, 0], sizes = [8, 32], strides = [1, 1]} : vector<8x128xf32> to vector<8x32xf32>
    %119 = arith.negf %118 : vector<8x32xf32>
    %120 = math.exp %119 : vector<8x32xf32>
    %cst_38 = arith.constant 1.000000e+00 : f32
    %121 = vector.broadcast %cst_38 : f32 to vector<8x32xf32>
    %122 = arith.addf %121, %120 : vector<8x32xf32>
    %123 = arith.divf %121, %122 : vector<8x32xf32>
    %124 = vector.extract_strided_slice %117 {offsets = [0, 32], sizes = [8, 32], strides = [1, 1]} : vector<8x128xf32> to vector<8x32xf32>
    %125 = arith.negf %124 : vector<8x32xf32>
    %126 = math.exp %125 : vector<8x32xf32>
    %cst_39 = arith.constant 1.000000e+00 : f32
    %127 = vector.broadcast %cst_39 : f32 to vector<8x32xf32>
    %128 = arith.addf %127, %126 : vector<8x32xf32>
    %129 = arith.divf %127, %128 : vector<8x32xf32>
    %130 = vector.extract_strided_slice %117 {offsets = [0, 64], sizes = [8, 32], strides = [1, 1]} : vector<8x128xf32> to vector<8x32xf32>
    %131 = math.tanh %130 : vector<8x32xf32>
    %132 = vector.extract_strided_slice %117 {offsets = [0, 96], sizes = [8, 32], strides = [1, 1]} : vector<8x128xf32> to vector<8x32xf32>
    %133 = arith.negf %132 : vector<8x32xf32>
    %134 = math.exp %133 : vector<8x32xf32>
    %cst_40 = arith.constant 1.000000e+00 : f32
    %135 = vector.broadcast %cst_40 : f32 to vector<8x32xf32>
    %136 = arith.addf %135, %134 : vector<8x32xf32>
    %137 = arith.divf %135, %136 : vector<8x32xf32>
    %138 = arith.mulf %129, %107 : vector<8x32xf32>
    %139 = arith.mulf %123, %131 : vector<8x32xf32>
    %140 = arith.addf %138, %139 : vector<8x32xf32>
    %141 = math.tanh %140 : vector<8x32xf32>
    %142 = arith.mulf %137, %141 : vector<8x32xf32>
    %143 = arith.index_cast %113 : i32 to index
    %c0_41 = arith.constant 0 : index
    %144 = vector.load %arg10[%143, %c0_41] : memref<64x32xf32, #tpu.memory_space<vmem>>, vector<8x32xf32>
    tpu.vector_store %arg10[%143, %c0_41], %142 {strides = array<i32>} : memref<64x32xf32, #tpu.memory_space<vmem>>, vector<8x32xf32>,
    %c4_i32 = arith.constant 4 : i32
    %c8_i32_42 = arith.constant 8 : i32
    %145 = arith.muli %c4_i32, %c8_i32_42 : i32
    %146 = tpu.assume_multiple %145, 8 : i32
    %147 = arith.index_cast %146 : i32 to index
    %c0_43 = arith.constant 0 : index
    %148 = vector.load %arg9[%147, %c0_43] : memref<64x128xf32, #tpu.memory_space<vmem>>, vector<8x128xf32>
    %cst_44 = arith.constant dense<0.000000e+00> : vector<8x128xf32>
    %149 = tpu.matmul %142, %10, %cst_44 {dimension_numbers = #tpu.dot_dimension_numbers<[1], [0], [0], [1], [0, 0, 1, 1], [], []>} : vector<8x32xf32>, vector<32x128xf32>, vector<8x128xf32> -> vector<8x128xf32>
    %150 = arith.addf %148, %149 : vector<8x128xf32>
    %151 = vector.extract_strided_slice %150 {offsets = [0, 0], sizes = [8, 32], strides = [1, 1]} : vector<8x128xf32> to vector<8x32xf32>
    %152 = arith.negf %151 : vector<8x32xf32>
    %153 = math.exp %152 : vector<8x32xf32>
    %cst_45 = arith.constant 1.000000e+00 : f32
    %154 = vector.broadcast %cst_45 : f32 to vector<8x32xf32>
    %155 = arith.addf %154, %153 : vector<8x32xf32>
    %156 = arith.divf %154, %155 : vector<8x32xf32>
    %157 = vector.extract_strided_slice %150 {offsets = [0, 32], sizes = [8, 32], strides = [1, 1]} : vector<8x128xf32> to vector<8x32xf32>
    %158 = arith.negf %157 : vector<8x32xf32>
    %159 = math.exp %158 : vector<8x32xf32>
    %cst_46 = arith.constant 1.000000e+00 : f32
    %160 = vector.broadcast %cst_46 : f32 to vector<8x32xf32>
    %161 = arith.addf %160, %159 : vector<8x32xf32>
    %162 = arith.divf %160, %161 : vector<8x32xf32>
    %163 = vector.extract_strided_slice %150 {offsets = [0, 64], sizes = [8, 32], strides = [1, 1]} : vector<8x128xf32> to vector<8x32xf32>
    %164 = math.tanh %163 : vector<8x32xf32>
    %165 = vector.extract_strided_slice %150 {offsets = [0, 96], sizes = [8, 32], strides = [1, 1]} : vector<8x128xf32> to vector<8x32xf32>
    %166 = arith.negf %165 : vector<8x32xf32>
    %167 = math.exp %166 : vector<8x32xf32>
    %cst_47 = arith.constant 1.000000e+00 : f32
    %168 = vector.broadcast %cst_47 : f32 to vector<8x32xf32>
    %169 = arith.addf %168, %167 : vector<8x32xf32>
    %170 = arith.divf %168, %169 : vector<8x32xf32>
    %171 = arith.mulf %162, %140 : vector<8x32xf32>
    %172 = arith.mulf %156, %164 : vector<8x32xf32>
    %173 = arith.addf %171, %172 : vector<8x32xf32>
    %174 = math.tanh %173 : vector<8x32xf32>
    %175 = arith.mulf %170, %174 : vector<8x32xf32>
    %176 = arith.index_cast %146 : i32 to index
    %c0_48 = arith.constant 0 : index
    %177 = vector.load %arg10[%176, %c0_48] : memref<64x32xf32, #tpu.memory_space<vmem>>, vector<8x32xf32>
    tpu.vector_store %arg10[%176, %c0_48], %175 {strides = array<i32>} : memref<64x32xf32, #tpu.memory_space<vmem>>, vector<8x32xf32>,
    %c5_i32 = arith.constant 5 : i32
    %c8_i32_49 = arith.constant 8 : i32
    %178 = arith.muli %c5_i32, %c8_i32_49 : i32
    %179 = tpu.assume_multiple %178, 8 : i32
    %180 = arith.index_cast %179 : i32 to index
    %c0_50 = arith.constant 0 : index
    %181 = vector.load %arg9[%180, %c0_50] : memref<64x128xf32, #tpu.memory_space<vmem>>, vector<8x128xf32>
    %cst_51 = arith.constant dense<0.000000e+00> : vector<8x128xf32>
    %182 = tpu.matmul %175, %10, %cst_51 {dimension_numbers = #tpu.dot_dimension_numbers<[1], [0], [0], [1], [0, 0, 1, 1], [], []>} : vector<8x32xf32>, vector<32x128xf32>, vector<8x128xf32> -> vector<8x128xf32>
    %183 = arith.addf %181, %182 : vector<8x128xf32>
    %184 = vector.extract_strided_slice %183 {offsets = [0, 0], sizes = [8, 32], strides = [1, 1]} : vector<8x128xf32> to vector<8x32xf32>
    %185 = arith.negf %184 : vector<8x32xf32>
    %186 = math.exp %185 : vector<8x32xf32>
    %cst_52 = arith.constant 1.000000e+00 : f32
    %187 = vector.broadcast %cst_52 : f32 to vector<8x32xf32>
    %188 = arith.addf %187, %186 : vector<8x32xf32>
    %189 = arith.divf %187, %188 : vector<8x32xf32>
    %190 = vector.extract_strided_slice %183 {offsets = [0, 32], sizes = [8, 32], strides = [1, 1]} : vector<8x128xf32> to vector<8x32xf32>
    %191 = arith.negf %190 : vector<8x32xf32>
    %192 = math.exp %191 : vector<8x32xf32>
    %cst_53 = arith.constant 1.000000e+00 : f32
    %193 = vector.broadcast %cst_53 : f32 to vector<8x32xf32>
    %194 = arith.addf %193, %192 : vector<8x32xf32>
    %195 = arith.divf %193, %194 : vector<8x32xf32>
    %196 = vector.extract_strided_slice %183 {offsets = [0, 64], sizes = [8, 32], strides = [1, 1]} : vector<8x128xf32> to vector<8x32xf32>
    %197 = math.tanh %196 : vector<8x32xf32>
    %198 = vector.extract_strided_slice %183 {offsets = [0, 96], sizes = [8, 32], strides = [1, 1]} : vector<8x128xf32> to vector<8x32xf32>
    %199 = arith.negf %198 : vector<8x32xf32>
    %200 = math.exp %199 : vector<8x32xf32>
    %cst_54 = arith.constant 1.000000e+00 : f32
    %201 = vector.broadcast %cst_54 : f32 to vector<8x32xf32>
    %202 = arith.addf %201, %200 : vector<8x32xf32>
    %203 = arith.divf %201, %202 : vector<8x32xf32>
    %204 = arith.mulf %195, %173 : vector<8x32xf32>
    %205 = arith.mulf %189, %197 : vector<8x32xf32>
    %206 = arith.addf %204, %205 : vector<8x32xf32>
    %207 = math.tanh %206 : vector<8x32xf32>
    %208 = arith.mulf %203, %207 : vector<8x32xf32>
    %209 = arith.index_cast %179 : i32 to index
    %c0_55 = arith.constant 0 : index
    %210 = vector.load %arg10[%209, %c0_55] : memref<64x32xf32, #tpu.memory_space<vmem>>, vector<8x32xf32>
    tpu.vector_store %arg10[%209, %c0_55], %208 {strides = array<i32>} : memref<64x32xf32, #tpu.memory_space<vmem>>, vector<8x32xf32>,
    %c6_i32 = arith.constant 6 : i32
    %c8_i32_56 = arith.constant 8 : i32
    %211 = arith.muli %c6_i32, %c8_i32_56 : i32
    %212 = tpu.assume_multiple %211, 8 : i32
    %213 = arith.index_cast %212 : i32 to index
    %c0_57 = arith.constant 0 : index
    %214 = vector.load %arg9[%213, %c0_57] : memref<64x128xf32, #tpu.memory_space<vmem>>, vector<8x128xf32>
    %cst_58 = arith.constant dense<0.000000e+00> : vector<8x128xf32>
    %215 = tpu.matmul %208, %10, %cst_58 {dimension_numbers = #tpu.dot_dimension_numbers<[1], [0], [0], [1], [0, 0, 1, 1], [], []>} : vector<8x32xf32>, vector<32x128xf32>, vector<8x128xf32> -> vector<8x128xf32>
    %216 = arith.addf %214, %215 : vector<8x128xf32>
    %217 = vector.extract_strided_slice %216 {offsets = [0, 0], sizes = [8, 32], strides = [1, 1]} : vector<8x128xf32> to vector<8x32xf32>
    %218 = arith.negf %217 : vector<8x32xf32>
    %219 = math.exp %218 : vector<8x32xf32>
    %cst_59 = arith.constant 1.000000e+00 : f32
    %220 = vector.broadcast %cst_59 : f32 to vector<8x32xf32>
    %221 = arith.addf %220, %219 : vector<8x32xf32>
    %222 = arith.divf %220, %221 : vector<8x32xf32>
    %223 = vector.extract_strided_slice %216 {offsets = [0, 32], sizes = [8, 32], strides = [1, 1]} : vector<8x128xf32> to vector<8x32xf32>
    %224 = arith.negf %223 : vector<8x32xf32>
    %225 = math.exp %224 : vector<8x32xf32>
    %cst_60 = arith.constant 1.000000e+00 : f32
    %226 = vector.broadcast %cst_60 : f32 to vector<8x32xf32>
    %227 = arith.addf %226, %225 : vector<8x32xf32>
    %228 = arith.divf %226, %227 : vector<8x32xf32>
    %229 = vector.extract_strided_slice %216 {offsets = [0, 64], sizes = [8, 32], strides = [1, 1]} : vector<8x128xf32> to vector<8x32xf32>
    %230 = math.tanh %229 : vector<8x32xf32>
    %231 = vector.extract_strided_slice %216 {offsets = [0, 96], sizes = [8, 32], strides = [1, 1]} : vector<8x128xf32> to vector<8x32xf32>
    %232 = arith.negf %231 : vector<8x32xf32>
    %233 = math.exp %232 : vector<8x32xf32>
    %cst_61 = arith.constant 1.000000e+00 : f32
    %234 = vector.broadcast %cst_61 : f32 to vector<8x32xf32>
    %235 = arith.addf %234, %233 : vector<8x32xf32>
    %236 = arith.divf %234, %235 : vector<8x32xf32>
    %237 = arith.mulf %228, %206 : vector<8x32xf32>
    %238 = arith.mulf %222, %230 : vector<8x32xf32>
    %239 = arith.addf %237, %238 : vector<8x32xf32>
    %240 = math.tanh %239 : vector<8x32xf32>
    %241 = arith.mulf %236, %240 : vector<8x32xf32>
    %242 = arith.index_cast %212 : i32 to index
    %c0_62 = arith.constant 0 : index
    %243 = vector.load %arg10[%242, %c0_62] : memref<64x32xf32, #tpu.memory_space<vmem>>, vector<8x32xf32>
    tpu.vector_store %arg10[%242, %c0_62], %241 {strides = array<i32>} : memref<64x32xf32, #tpu.memory_space<vmem>>, vector<8x32xf32>,
    %c7_i32 = arith.constant 7 : i32
    %c8_i32_63 = arith.constant 8 : i32
    %244 = arith.muli %c7_i32, %c8_i32_63 : i32
    %245 = tpu.assume_multiple %244, 8 : i32
    %246 = arith.index_cast %245 : i32 to index
    %c0_64 = arith.constant 0 : index
    %247 = vector.load %arg9[%246, %c0_64] : memref<64x128xf32, #tpu.memory_space<vmem>>, vector<8x128xf32>
    %cst_65 = arith.constant dense<0.000000e+00> : vector<8x128xf32>
    %248 = tpu.matmul %241, %10, %cst_65 {dimension_numbers = #tpu.dot_dimension_numbers<[1], [0], [0], [1], [0, 0, 1, 1], [], []>} : vector<8x32xf32>, vector<32x128xf32>, vector<8x128xf32> -> vector<8x128xf32>
    %249 = arith.addf %247, %248 : vector<8x128xf32>
    %250 = vector.extract_strided_slice %249 {offsets = [0, 0], sizes = [8, 32], strides = [1, 1]} : vector<8x128xf32> to vector<8x32xf32>
    %251 = arith.negf %250 : vector<8x32xf32>
    %252 = math.exp %251 : vector<8x32xf32>
    %cst_66 = arith.constant 1.000000e+00 : f32
    %253 = vector.broadcast %cst_66 : f32 to vector<8x32xf32>
    %254 = arith.addf %253, %252 : vector<8x32xf32>
    %255 = arith.divf %253, %254 : vector<8x32xf32>
    %256 = vector.extract_strided_slice %249 {offsets = [0, 32], sizes = [8, 32], strides = [1, 1]} : vector<8x128xf32> to vector<8x32xf32>
    %257 = arith.negf %256 : vector<8x32xf32>
    %258 = math.exp %257 : vector<8x32xf32>
    %cst_67 = arith.constant 1.000000e+00 : f32
    %259 = vector.broadcast %cst_67 : f32 to vector<8x32xf32>
    %260 = arith.addf %259, %258 : vector<8x32xf32>
    %261 = arith.divf %259, %260 : vector<8x32xf32>
    %262 = vector.extract_strided_slice %249 {offsets = [0, 64], sizes = [8, 32], strides = [1, 1]} : vector<8x128xf32> to vector<8x32xf32>
    %263 = math.tanh %262 : vector<8x32xf32>
    %264 = vector.extract_strided_slice %249 {offsets = [0, 96], sizes = [8, 32], strides = [1, 1]} : vector<8x128xf32> to vector<8x32xf32>
    %265 = arith.negf %264 : vector<8x32xf32>
    %266 = math.exp %265 : vector<8x32xf32>
    %cst_68 = arith.constant 1.000000e+00 : f32
    %267 = vector.broadcast %cst_68 : f32 to vector<8x32xf32>
    %268 = arith.addf %267, %266 : vector<8x32xf32>
    %269 = arith.divf %267, %268 : vector<8x32xf32>
    %270 = arith.mulf %261, %239 : vector<8x32xf32>
    %271 = arith.mulf %255, %263 : vector<8x32xf32>
    %272 = arith.addf %270, %271 : vector<8x32xf32>
    %273 = math.tanh %272 : vector<8x32xf32>
    %274 = arith.mulf %269, %273 : vector<8x32xf32>
    %275 = arith.index_cast %245 : i32 to index
    %c0_69 = arith.constant 0 : index
    %276 = vector.load %arg10[%275, %c0_69] : memref<64x32xf32, #tpu.memory_space<vmem>>, vector<8x32xf32>
    tpu.vector_store %arg10[%275, %c0_69], %274 {strides = array<i32>} : memref<64x32xf32, #tpu.memory_space<vmem>>, vector<8x32xf32>,
    %c8_i32_70 = arith.constant 8 : i32
    %c0_71 = arith.constant 0 : index
    %c0_72 = arith.constant 0 : index
    %277 = vector.load %arg11[%c0_71, %c0_72] : memref<8x32xf32, #tpu.memory_space<vmem>>, vector<8x32xf32>
    tpu.vector_store %arg11[%c0_71, %c0_72], %274 {strides = array<i32>} : memref<8x32xf32, #tpu.memory_space<vmem>>, vector<8x32xf32>,
    %c0_73 = arith.constant 0 : index
    %c0_74 = arith.constant 0 : index
    %278 = vector.load %arg12[%c0_73, %c0_74] : memref<8x32xf32, #tpu.memory_space<vmem>>, vector<8x32xf32>
    tpu.vector_store %arg12[%c0_73, %c0_74], %272 {strides = array<i32>} : memref<8x32xf32, #tpu.memory_space<vmem>>, vector<8x32xf32>,
    %c0_75 = arith.constant 0 : index
    %c0_76 = arith.constant 0 : index
    %279 = vector.load %arg10[%c0_75, %c0_76] : memref<64x32xf32, #tpu.memory_space<vmem>>, vector<64x32xf32>
    %c0_77 = arith.constant 0 : index
    %c0_78 = arith.constant 0 : index
    %280 = vector.load %arg5[%c0_77, %c0_78] : memref<32x8xf32, #tpu.memory_space<vmem>>, vector<32x8xf32>
    %cst_79 = arith.constant dense<0.000000e+00> : vector<64x8xf32>
    %281 = tpu.matmul %279, %280, %cst_79 {dimension_numbers = #tpu.dot_dimension_numbers<[1], [0], [0], [1], [0, 0, 1, 1], [], []>} : vector<64x32xf32>, vector<32x8xf32>, vector<64x8xf32> -> vector<64x8xf32>
    %c0_80 = arith.constant 0 : index
    %c0_81 = arith.constant 0 : index
    %282 = vector.load %arg6[%c0_80, %c0_81] : memref<1x8xf32, #tpu.memory_space<vmem>>, vector<1x8xf32>
    %283 = vector.broadcast %282 : vector<1x8xf32> to vector<64x8xf32>
    %284 = arith.addf %281, %283 : vector<64x8xf32>
    %c0_82 = arith.constant 0 : index
    %c0_83 = arith.constant 0 : index
    %285 = vector.load %arg7[%c0_82, %c0_83] : memref<64x8xf32, #tpu.memory_space<vmem>>, vector<64x8xf32>
    tpu.vector_store %arg7[%c0_82, %c0_83], %284 {strides = array<i32>} : memref<64x8xf32, #tpu.memory_space<vmem>>, vector<64x8xf32>,
    %c0_i32_84 = arith.constant 0 : i32
    %286 = arith.cmpi eq, %arg0, %c0_i32_84 : i32
    %287 = arith.extui %286 : i1 to i32
    %c0_i32_85 = arith.constant 0 : i32
    %288 = arith.cmpi ne, %287, %c0_i32_85 : i32
    scf.if %288 {
      %c0_86 = arith.constant 0 : index
      %c0_87 = arith.constant 0 : index
      %289 = vector.load %arg8[%c0_86, %c0_87] : memref<8x32xf32, #tpu.memory_space<vmem>>, vector<8x32xf32>
      tpu.vector_store %arg8[%c0_86, %c0_87], %274 {strides = array<i32>} : memref<8x32xf32, #tpu.memory_space<vmem>>, vector<8x32xf32>,
    } else {
    }
    return
  }
  func.func @transform_0(%arg0: i32) -> (i32, i32) {
    %c0_i32 = arith.constant 0 : i32
    %c0_i32_0 = arith.constant 0 : i32
    return %arg0, %c0_i32 : i32, i32
  }
  func.func @transform_1(%arg0: i32) -> (i32, i32) {
    %c0_i32 = arith.constant 0 : i32
    %c0_i32_0 = arith.constant 0 : i32
    %c0_i32_1 = arith.constant 0 : i32
    return %c0_i32, %c0_i32_0 : i32, i32
  }
  func.func @transform_2(%arg0: i32) -> (i32, i32) {
    %c0_i32 = arith.constant 0 : i32
    %c0_i32_0 = arith.constant 0 : i32
    %c0_i32_1 = arith.constant 0 : i32
    return %c0_i32, %c0_i32_0 : i32, i32
  }
  func.func @transform_3(%arg0: i32) -> (i32, i32) {
    %c0_i32 = arith.constant 0 : i32
    %c0_i32_0 = arith.constant 0 : i32
    %c0_i32_1 = arith.constant 0 : i32
    return %c0_i32, %c0_i32_0 : i32, i32
  }
  func.func @transform_4(%arg0: i32) -> (i32, i32) {
    %c0_i32 = arith.constant 0 : i32
    %c0_i32_0 = arith.constant 0 : i32
    %c0_i32_1 = arith.constant 0 : i32
    return %c0_i32, %c0_i32_0 : i32, i32
  }
  func.func @transform_5(%arg0: i32) -> (i32, i32) {
    %c0_i32 = arith.constant 0 : i32
    %c0_i32_0 = arith.constant 0 : i32
    %c0_i32_1 = arith.constant 0 : i32
    return %c0_i32, %c0_i32_0 : i32, i32
  }
  func.func @transform_6(%arg0: i32) -> (i32, i32) {
    %c0_i32 = arith.constant 0 : i32
    %c0_i32_0 = arith.constant 0 : i32
    return %arg0, %c0_i32 : i32, i32
  }
  func.func @transform_7(%arg0: i32) -> (i32, i32) {
    %c0_i32 = arith.constant 0 : i32
    %c0_i32_0 = arith.constant 0 : i32
    %c0_i32_1 = arith.constant 0 : i32
    return %c0_i32, %c0_i32_0 : i32, i32
  }
}

</mosaic_0001>

<bundles_post_ra>
// kernel: _lstm_encoder_forward_batched.1
= control target key start
LH: loop header
LB: loop body
LE: loop exit
PB: predicated region body
PF: predicated region fallthrough
CT: control target
= control target key end

     0   :  { %vm29_vm0 = vcmask 261120   ;;  %v890_v2 = vmov 0.0   ;;  %vm46_vm1 = vcmask 130048   ;;  %s891_s17 = smov 64   ;;  %s892_s18 = smov 32   ;;  %s1170_s1 = inlined_call_operand.vmem [shape: f32[16,128], index: 1, kind: input, shape index: {}]   ;;  %s1171_s0 = inlined_call_operand.vmem [shape: f32[64,16], index: 0, kind: input, shape index: {}]   ;;  %s1172_s2 = inlined_call_operand.vmem [shape: f32[32,128], index: 2, kind: input, shape index: {}]   ;;  %s1173_s3 = inlined_call_operand.vmem [shape: f32[1,128], index: 3, kind: input, shape index: {}]   ;;  %s1174_s4 = inlined_call_operand.vmem [shape: f32[32,8], index: 4, kind: input, shape index: {}]   ;;  %s1175_s5 = inlined_call_operand.vmem [shape: f32[1,8], index: 5, kind: input, shape index: {}]   ;;  %s1176_s6 = inlined_call_operand.vmem [shape: f32[64,8], index: 6, kind: output, shape index: {0}]   ;;  %s1177_s7 = inlined_call_operand.vmem [shape: f32[8,32], index: 7, kind: output, shape index: {1}]  }
   0x1   :  { %v41_v0 = vld [vmem:[%s1170_s1 + $0x8] sm:$0xff]  ;;  %v40_v1 = vld [vmem:[%s1170_s1] sm:$0xff]  ;;  %30 = vst.msk [vmem:[#allocation4] sm:$0xff] %vm29_vm0, %v890_v2  ;;  %v39_v3 = vld [vmem:[%s1171_s0 + $0x38] sm:$0xff]  ;;  %s893_s27 = smov 96  }
   0x2   :  { %814 = vmatpush.msra.mxu2 %v41_v0  ;;  %v947_v4 = vld [vmem:[%s1172_s2 + $0x18] sm:$0xff]  ;;  %31 = vst.msk [vmem:[#allocation5] sm:$0xff] %vm29_vm0, %v890_v2  ;;  %85 = vmatpush.msra.mxu0 %v41_v0  ;;  %v32_v5 = vld [vmem:[%s1171_s0] sm:$0xff]  ;;  %v959_v6 = vld [vmem:[%s1172_s2 + $0x10] sm:$0xff] }
   0x3   :  { %282 = vmatpush.msra.mxu3 %v947_v4  ;;  %350 = vmatpush.msra.mxu1 %v947_v4  ;;  %v967_v7 = vld [vmem:[%s1172_s2 + $0x8] sm:$0xff]  ;;  %v975_v8 = vld [vmem:[%s1172_s2] sm:$0xff] }
   0x4   :  { %815 = vmatpush.msra.mxu2 %v40_v1  ;;  %86 = vmatpush.msra.mxu0 %v40_v1  ;;  %v1004_v12 = vld [vmem:[%s1173_s3] ss:$0 sm:$0xff]  ;;  %v33_v40 = vld [vmem:[%s1171_s0 + $0x8] sm:$0xff] }
   0x5   :  { %789 = vmatmul.msk.f32.vlgmr.msra.gmra.mxu2 %vm46_vm1, %v39_v3  ;;  %782 = vmatmul.msk.f32.vlgmr.msra.gmra.mxu0 %vm46_vm1, %v32_v5 }
   0x6   :  { %143 = vmatpush.msrb.mxu2 %v947_v4  ;;  %283 = vmatpush.msra.mxu3 %v959_v6 }
   0x7   :  { %351 = vmatpush.msra.mxu1 %v959_v6 }
   0x8   :  { %144 = vmatpush.msrb.mxu2 %v959_v6  ;;  %284 = vmatpush.msra.mxu3 %v967_v7  ;;  %v124_v9 = vld [vmem:[#allocation4] sm:$0xff] }
   0x9   :  { %352 = vmatpush.msra.mxu1 %v967_v7  ;;  %v125_v17 = vld [vmem:[#allocation5] sm:$0xff] }
   0xa   :  { %145 = vmatpush.msrb.mxu2 %v967_v7  ;;  %285 = vmatpush.msra.mxu3 %v975_v8 }
   0xb   :  { %353 = vmatpush.msra.mxu1 %v975_v8 }
   0xc   :  { %486 = vmatpush.msrb.mxu3 %v947_v4  ;;  %146 = vmatpush.msrb.mxu2 %v975_v8 }
   0xd   :  { %554 = vmatpush.msrb.mxu1 %v947_v4  ;;  %790 = vmatmul.msk.f32.vlgmr.msrb.gmra.mxu2 %vm29_vm0, %v124_v9 }
   0xe   :  { %487 = vmatpush.msrb.mxu3 %v959_v6  ;;  %214 = vmatpush.msra.mxu2 %v947_v4 }
   0xf   :  { %555 = vmatpush.msrb.mxu1 %v959_v6  ;;  %783 = vmatmul.msk.f32.gmra.mxu0 %vm46_vm1, %v33_v40 }
  0x10   :  { %488 = vmatpush.msrb.mxu3 %v967_v7  ;;  %215 = vmatpush.msra.mxu2 %v959_v6 }
  0x11   :  { %556 = vmatpush.msrb.mxu1 %v967_v7 }
  0x12   :  { %489 = vmatpush.msrb.mxu3 %v975_v8  ;;  %216 = vmatpush.msra.mxu2 %v967_v7 }
  0x13   :  { %557 = vmatpush.msrb.mxu1 %v975_v8 }
  0x14   :  { %217 = vmatpush.msra.mxu2 %v975_v8 }
  0x16   :  { %418 = vmatpush.msrb.mxu2 %v947_v4 }
  0x18   :  { %419 = vmatpush.msrb.mxu2 %v959_v6 }
  0x1a   :  { %420 = vmatpush.msrb.mxu2 %v967_v7 }
  0x1c   :  { %421 = vmatpush.msrb.mxu2 %v975_v8 }
  0x82   :  { %v88_v11 = vpop.f32.mrf.mxu0 }
  0x83   :  { %v89_v13 = vadd.f32 %v1004_v12, %v88_v11 }
  0x88   :  { %v999_v10 = vpop.f32.mrf.mxu2 }
  0x8c   :  { %v91_v42 = vpop.f32.mrf.mxu0 }
  0x8d   :  { %v92_v43 = vadd.f32 %v1004_v12, %v91_v42 }
  0x90   :  { %v148_v14 = vpop.f32.mrf.mxu2 }
  0x91   :  { %v151_v15 = vadd.f32 %v148_v14, %v89_v13 }
  0x93   :  { %826 = vtanh.f32 %v151_v15  ;;  %v791_v18 = vmul.f32 -1.442695, %v151_v15 }
  0x95   :  { %828 = vpow2.f32 %v791_v18 }
  0x99   :  { %v827_v16 = vpop.eup %826 }
  0x9a   :  { %178 = vrot.lane.b32.xlu0 %v827_v16, %s891_s17 }
  0x9b   :  { %v829_v19 = vpop.eup %828 }
  0x9c   :  { %v155_v20 = vadd.f32 1.0, %v829_v19 }
  0x9e   :  { %830 = vrcp.f32 %v155_v20  ;;  %v167_v26 = vand.u32 2147483648, %v155_v20  ;;  %vm161_vm3 = vweird.f32 %v155_v20  ;;  %v165_v27 = vand.u32 2147483647, %v155_v20 }
  0xa0   :  { %v168_v29 = vor.u32 1.1754944e-38, %v167_v26  ;;  %vm166_vm5 = vcmp.eq.f32.partialorder %v165_v27, 8.507059e+37 }
  0xa2   :  { %173 = vrot.lane.b32.xlu0 %v125_v17, %s892_s18 }
  0xa4   :  { %v831_v21 = vpop.eup %830 }
  0xa5   :  { %v157_v22 = vmul.f32 %v831_v21, %v155_v20  ;;  %vm162_vm2 = vweird.f32 %v831_v21 }
  0xa6   :  { %vm163_vm4 = vmor %vm161_vm3, %vm162_vm2 }
  0xa7   :  { %v158_v23 = vsub.f32 1.0, %v157_v22 }
  0xa9   :  { %v159_v24 = vmul.f32 %v831_v21, %v158_v23 }
  0xab   :  { %v160_v25 = vadd.f32 %v831_v21, %v159_v24 }
  0xad   :  { %v164_v28 = vsel %vm163_vm4, %v831_v21, %v160_v25 }
  0xae   :  { %v169_v31 = vsel %vm166_vm5, %v168_v29, %v164_v28 }
 0x10c   :  { %v179_v30 = vpop.permute.xlu0 %178 }
 0x10d   :  { %v181_v32 = vmul.f32 %v179_v30, %v169_v31 }
 0x10f   :  { %183 = vrot.lane.b32.xlu1 %v181_v32, %s892_s18  ;;  %v35_v32 = vld [vmem:[%s1171_s0 + $0x18] sm:$0xff] }
 0x114   :  { %v174_v33 = vpop.permute.xlu0 %173 }
 0x115   :  { %v176_v34 = vmul.f32 %v174_v33, %v169_v31 }
 0x181   :  { %v184_v35 = vpop.permute.xlu1 %183 }
 0x182   :  { %v186_v36 = vadd.f32 %v184_v35, %v176_v34 }
 0x184   :  { %832 = vtanh.f32 %v186_v36 }
 0x18a   :  { %v833_v37 = vpop.eup %832 }
 0x18b   :  { %189 = vrot.lane.b32.xlu1 %v833_v37, %s891_s17 }
 0x1fd   :  { %v190_v38 = vpop.permute.xlu1 %189 }
 0x1fe   :  { %v192_v39 = vmul.f32 %v190_v38, %v169_v31 }
 0x200   :  { %194 = vrot.lane.b32.xlu2 %v192_v39, %s892_s18 }
 0x25a   :  { %v195_v41 = vpop.permute.xlu2 %194 }
 0x25b   :  { %197 = vst.msk [vmem:[#allocation3] sm:$0xff] %vm29_vm0, %v195_v41  ;;  %792 = vmatmul.msk.f32.vlgmr.msra.gmra.mxu2 %vm29_vm0, %v195_v41 }
 0x25c   :  { %622 = vmatpush.msra.mxu2 %v947_v4  ;;  %v34_v4 = vld [vmem:[%s1171_s0 + $0x10] sm:$0xff] }
 0x25d   :  { %784 = vmatmul.msk.f32.gmra.mxu0 %vm46_vm1, %v34_v4 }
 0x25e   :  { %623 = vmatpush.msra.mxu2 %v959_v6 }
 0x260   :  { %624 = vmatpush.msra.mxu2 %v967_v7 }
 0x262   :  { %625 = vmatpush.msra.mxu2 %v975_v8 }
 0x265   :  { %785 = vmatmul.msk.f32.gmra.mxu0 %vm46_vm1, %v35_v32  ;;  %v688_v32 = vld [vmem:[%s1174_s4] sm:$0xff] }
 0x2da   :  { %v94_v6 = vpop.f32.mrf.mxu0 }
 0x2db   :  { %v95_v7 = vadd.f32 %v1004_v12, %v94_v6 }
 0x2de   :  { %v219_v44 = vpop.f32.mrf.mxu2 }
 0x2df   :  { %v222_v45 = vadd.f32 %v219_v44, %v92_v43 }
 0x2e1   :  { %834 = vtanh.f32 %v222_v45  ;;  %v793_v47 = vmul.f32 -1.442695, %v222_v45 }
 0x2e3   :  { %836 = vpow2.f32 %v793_v47 }
 0x2e7   :  { %v835_v46 = vpop.eup %834 }
 0x2e8   :  { %245 = vrot.lane.b32.xlu2 %v835_v46, %s891_s17 }
 0x2e9   :  { %v837_v48 = vpop.eup %836 }
 0x2ea   :  { %v226_v49 = vadd.f32 1.0, %v837_v48 }
 0x2ec   :  { %838 = vrcp.f32 %v226_v49  ;;  %v238_v55 = vand.u32 2147483648, %v226_v49  ;;  %vm232_vm7 = vweird.f32 %v226_v49  ;;  %v236_v56 = vand.u32 2147483647, %v226_v49 }
 0x2ee   :  { %v239_v58 = vor.u32 1.1754944e-38, %v238_v55  ;;  %vm237_vm9 = vcmp.eq.f32.partialorder %v236_v56, 8.507059e+37 }
 0x2f2   :  { %v839_v50 = vpop.eup %838 }
 0x2f3   :  { %v228_v51 = vmul.f32 %v839_v50, %v226_v49  ;;  %vm233_vm6 = vweird.f32 %v839_v50 }
 0x2f4   :  { %vm234_vm8 = vmor %vm232_vm7, %vm233_vm6 }
 0x2f5   :  { %v229_v52 = vsub.f32 1.0, %v228_v51 }
 0x2f7   :  { %v230_v53 = vmul.f32 %v839_v50, %v229_v52 }
 0x2f9   :  { %v231_v54 = vadd.f32 %v839_v50, %v230_v53 }
 0x2fb   :  { %v235_v57 = vsel %vm234_vm8, %v839_v50, %v231_v54  ;;  %vm761_vm8 = vcmask 64512  }
 0x2fc   :  { %v240_v60 = vsel %vm237_vm9, %v239_v58, %v235_v57 }
 0x2fd   :  { %v243_v62 = vmul.f32 %v240_v60, %v186_v36  ;;  %v97_v36 = vpop.f32.mrf.mxu0 }
 0x2fe   :  { %v98_v37 = vadd.f32 %v1004_v12, %v97_v36 }
 0x342   :  { %v246_v59 = vpop.permute.xlu2 %245 }
 0x343   :  { %v248_v61 = vmul.f32 %v246_v59, %v240_v60 }
 0x345   :  { %250 = vrot.lane.b32.xlu0 %v248_v61, %s892_s18 }
 0x3b7   :  { %v251_v63 = vpop.permute.xlu0 %250 }
 0x3b8   :  { %v253_v0 = vadd.f32 %v251_v63, %v243_v62  ;;  %v36_v62 = vld [vmem:[%s1171_s0 + $0x20] sm:$0xff] }
 0x3b9   :  { %786 = vmatmul.msk.f32.gmra.mxu0 %vm46_vm1, %v36_v62  ;;  %v38_v62 = vld [vmem:[%s1171_s0 + $0x30] sm:$0xff] }
 0x3ba   :  { %840 = vtanh.f32 %v253_v0 }
 0x3c0   :  { %v841_v1 = vpop.eup %840 }
 0x3c1   :  { %256 = vrot.lane.b32.xlu1 %v841_v1, %s891_s17 }
 0x433   :  { %v257_v2 = vpop.permute.xlu1 %256 }
 0x434   :  { %v259_v3 = vmul.f32 %v257_v2, %v240_v60 }
 0x436   :  { %261 = vrot.lane.b32.xlu2 %v259_v3, %s892_s18 }
 0x490   :  { %v262_v5 = vpop.permute.xlu2 %261 }
 0x491   :  { %265 = vst.msk [vmem:[#allocation3 + $0x8] sm:$0xff] %vm29_vm0, %v262_v5  ;;  %794 = vmatmul.msk.f32.vlgmr.msra.gmra.mxu3 %vm29_vm0, %v262_v5 }
 0x514   :  { %v287_v8 = vpop.f32.mrf.mxu3 }
 0x515   :  { %v290_v9 = vadd.f32 %v287_v8, %v95_v7 }
 0x517   :  { %842 = vtanh.f32 %v290_v9  ;;  %v795_v13 = vmul.f32 -1.442695, %v290_v9 }
 0x519   :  { %844 = vpow2.f32 %v795_v13 }
 0x51d   :  { %v843_v11 = vpop.eup %842 }
 0x51e   :  { %313 = vrot.lane.b32.xlu0 %v843_v11, %s891_s17 }
 0x51f   :  { %v845_v14 = vpop.eup %844 }
 0x520   :  { %v294_v15 = vadd.f32 1.0, %v845_v14 }
 0x522   :  { %846 = vrcp.f32 %v294_v15  ;;  %v306_v21 = vand.u32 2147483648, %v294_v15  ;;  %vm300_vm11 = vweird.f32 %v294_v15  ;;  %v304_v22 = vand.u32 2147483647, %v294_v15 }
 0x524   :  { %v307_v24 = vor.u32 1.1754944e-38, %v306_v21  ;;  %vm305_vm13 = vcmp.eq.f32.partialorder %v304_v22, 8.507059e+37 }
 0x528   :  { %v847_v16 = vpop.eup %846 }
 0x529   :  { %v296_v17 = vmul.f32 %v847_v16, %v294_v15  ;;  %vm301_vm10 = vweird.f32 %v847_v16 }
 0x52a   :  { %vm302_vm12 = vmor %vm300_vm11, %vm301_vm10 }
 0x52b   :  { %v297_v18 = vsub.f32 1.0, %v296_v17 }
 0x52d   :  { %v298_v19 = vmul.f32 %v847_v16, %v297_v18 }
 0x52f   :  { %v299_v20 = vadd.f32 %v847_v16, %v298_v19 }
 0x531   :  { %v303_v23 = vsel %vm302_vm12, %v847_v16, %v299_v20 }
 0x532   :  { %v308_v26 = vsel %vm305_vm13, %v307_v24, %v303_v23 }
 0x533   :  { %v311_v28 = vmul.f32 %v308_v26, %v253_v0  ;;  %v100_v0 = vpop.f32.mrf.mxu0 }
 0x534   :  { %v101_v1 = vadd.f32 %v1004_v12, %v100_v0 }
 0x590   :  { %v314_v25 = vpop.permute.xlu0 %313 }
 0x591   :  { %v316_v27 = vmul.f32 %v314_v25, %v308_v26 }
 0x593   :  { %318 = vrot.lane.b32.xlu1 %v316_v27, %s892_s18 }
 0x605   :  { %v319_v29 = vpop.permute.xlu1 %318 }
 0x606   :  { %v321_v30 = vadd.f32 %v319_v29, %v311_v28  ;;  %v691_v28 = vld [vmem:[%s1174_s4 + $0x18] sm:$0xff]  ;;  %v690_v29 = vld [vmem:[%s1174_s4 + $0x10] sm:$0xff] }
 0x607   :  { %816 = vmatpush.msra.mxu3 %v691_v28 }
 0x608   :  { %848 = vtanh.f32 %v321_v30 }
 0x609   :  { %817 = vmatpush.msra.mxu3 %v690_v29 }
 0x60e   :  { %v849_v31 = vpop.eup %848 }
 0x60f   :  { %324 = vrot.lane.b32.xlu2 %v849_v31, %s891_s17  ;;  %v689_v31 = vld [vmem:[%s1174_s4 + $0x8] sm:$0xff] }
 0x610   :  { %818 = vmatpush.msra.mxu3 %v689_v31 }
 0x612   :  { %819 = vmatpush.msra.mxu3 %v688_v32 }
 0x669   :  { %v325_v33 = vpop.permute.xlu2 %324 }
 0x66a   :  { %v327_v34 = vmul.f32 %v325_v33, %v308_v26 }
 0x66c   :  { %329 = vrot.lane.b32.xlu0 %v327_v34, %s892_s18 }
 0x6de   :  { %v330_v35 = vpop.permute.xlu0 %329 }
 0x6df   :  { %333 = vst.msk [vmem:[#allocation3 + $0x10] sm:$0xff] %vm29_vm0, %v330_v35  ;;  %796 = vmatmul.msk.f32.vlgmr.msra.gmra.mxu1 %vm29_vm0, %v330_v35 }
 0x6e0   :  { %732 = vmatpush.msra.mxu1 %v691_v28 }
 0x6e2   :  { %733 = vmatpush.msra.mxu1 %v690_v29 }
 0x6e4   :  { %734 = vmatpush.msra.mxu1 %v689_v31 }
 0x6e6   :  { %735 = vmatpush.msra.mxu1 %v688_v32 }
 0x75c   :  { %v355_v38 = vpop.f32.mrf.mxu1 }
 0x75d   :  { %v358_v39 = vadd.f32 %v355_v38, %v98_v37 }
 0x75f   :  { %850 = vtanh.f32 %v358_v39  ;;  %v797_v41 = vmul.f32 -1.442695, %v358_v39  ;;  %v1086_v39 = vld [vmem:[%s1175_s5] ss:$0 sm:$0xff] }
 0x761   :  { %852 = vpow2.f32 %v797_v41 }
 0x765   :  { %v851_v40 = vpop.eup %850 }
 0x766   :  { %381 = vrot.lane.b32.xlu1 %v851_v40, %s891_s17 }
 0x767   :  { %v853_v42 = vpop.eup %852 }
 0x768   :  { %v362_v43 = vadd.f32 1.0, %v853_v42 }
 0x76a   :  { %854 = vrcp.f32 %v362_v43  ;;  %v374_v49 = vand.u32 2147483648, %v362_v43  ;;  %vm368_vm15 = vweird.f32 %v362_v43  ;;  %v372_v50 = vand.u32 2147483647, %v362_v43 }
 0x76c   :  { %v375_v52 = vor.u32 1.1754944e-38, %v374_v49  ;;  %vm373_vm3 = vcmp.eq.f32.partialorder %v372_v50, 8.507059e+37 }
 0x770   :  { %v855_v44 = vpop.eup %854 }
 0x771   :  { %v364_v45 = vmul.f32 %v855_v44, %v362_v43  ;;  %vm369_vm14 = vweird.f32 %v855_v44 }
 0x772   :  { %vm370_vm2 = vmor %vm368_vm15, %vm369_vm14 }
 0x773   :  { %v365_v46 = vsub.f32 1.0, %v364_v45 }
 0x775   :  { %v366_v47 = vmul.f32 %v855_v44, %v365_v46 }
 0x777   :  { %v367_v48 = vadd.f32 %v855_v44, %v366_v47 }
 0x779   :  { %v371_v51 = vsel %vm370_vm2, %v855_v44, %v367_v48 }
 0x77a   :  { %v376_v54 = vsel %vm373_vm3, %v375_v52, %v371_v51 }
 0x77b   :  { %v379_v56 = vmul.f32 %v376_v54, %v321_v30  ;;  %v37_v30 = vld [vmem:[%s1171_s0 + $0x28] sm:$0xff] }
 0x77c   :  { %787 = vmatmul.msk.f32.gmra.mxu0 %vm46_vm1, %v37_v30 }
 0x784   :  { %788 = vmatmul.msk.f32.gmra.mxu0 %vm46_vm1, %v38_v62 }
 0x7d8   :  { %v382_v53 = vpop.permute.xlu1 %381 }
 0x7d9   :  { %v384_v55 = vmul.f32 %v382_v53, %v376_v54 }
 0x7db   :  { %386 = vrot.lane.b32.xlu2 %v384_v55, %s892_s18 }
 0x7f9   :  { %v103_v35 = vpop.f32.mrf.mxu0 }
 0x7fa   :  { %v104_v36 = vadd.f32 %v1004_v12, %v103_v35 }
 0x835   :  { %v387_v57 = vpop.permute.xlu2 %386 }
 0x836   :  { %v389_v58 = vadd.f32 %v387_v57, %v379_v56 }
 0x838   :  { %856 = vtanh.f32 %v389_v58 }
 0x83e   :  { %v857_v59 = vpop.eup %856 }
 0x83f   :  { %392 = vrot.lane.b32.xlu0 %v857_v59, %s891_s17 }
 0x8b1   :  { %v393_v60 = vpop.permute.xlu0 %392 }
 0x8b2   :  { %v395_v61 = vmul.f32 %v393_v60, %v376_v54 }
 0x8b4   :  { %397 = vrot.lane.b32.xlu1 %v395_v61, %s892_s18 }
 0x926   :  { %v398_v63 = vpop.permute.xlu1 %397 }
 0x927   :  { %401 = vst.msk [vmem:[#allocation3 + $0x18] sm:$0xff] %vm29_vm0, %v398_v63  ;;  %798 = vmatmul.msk.f32.vlgmr.msrb.gmra.mxu2 %vm29_vm0, %v398_v63 }
 0x9aa   :  { %v423_v2 = vpop.f32.mrf.mxu2 }
 0x9ab   :  { %v426_v3 = vadd.f32 %v423_v2, %v101_v1  ;;  %v680_v2 = vld [vmem:[#allocation3] sm:$0xff] }
 0x9ad   :  { %858 = vtanh.f32 %v426_v3  ;;  %v799_v5 = vmul.f32 -1.442695, %v426_v3 }
 0x9af   :  { %860 = vpow2.f32 %v799_v5  ;;  %v682_v5 = vld [vmem:[#allocation3 + $0x10] sm:$0xff] }
 0x9b3   :  { %v859_v4 = vpop.eup %858 }
 0x9b4   :  { %449 = vrot.lane.b32.xlu2 %v859_v4, %s891_s17  ;;  %v681_v4 = vld [vmem:[#allocation3 + $0x8] sm:$0xff] }
 0x9b5   :  { %v861_v6 = vpop.eup %860 }
 0x9b6   :  { %v430_v7 = vadd.f32 1.0, %v861_v6  ;;  %v683_v6 = vld [vmem:[#allocation3 + $0x18] sm:$0xff] }
 0x9b8   :  { %862 = vrcp.f32 %v430_v7  ;;  %v442_v15 = vand.u32 2147483648, %v430_v7  ;;  %vm436_vm5 = vweird.f32 %v430_v7  ;;  %v440_v16 = vand.u32 2147483647, %v430_v7 }
 0x9ba   :  { %v443_v18 = vor.u32 1.1754944e-38, %v442_v15  ;;  %vm441_vm7 = vcmp.eq.f32.partialorder %v440_v16, 8.507059e+37 }
 0x9be   :  { %v863_v8 = vpop.eup %862 }
 0x9bf   :  { %v432_v9 = vmul.f32 %v863_v8, %v430_v7  ;;  %vm437_vm4 = vweird.f32 %v863_v8  ;;  %v106_v7 = vpop.f32.mrf.mxu0 }
 0x9c0   :  { %vm438_vm6 = vmor %vm436_vm5, %vm437_vm4 }
 0x9c1   :  { %v433_v11 = vsub.f32 1.0, %v432_v9 }
 0x9c3   :  { %v434_v13 = vmul.f32 %v863_v8, %v433_v11 }
 0x9c5   :  { %v435_v14 = vadd.f32 %v863_v8, %v434_v13 }
 0x9c7   :  { %v439_v17 = vsel %vm438_vm6, %v863_v8, %v435_v14  ;;  %v107_v8 = vadd.f32 %v1004_v12, %v106_v7 }
 0x9c8   :  { %v444_v20 = vsel %vm441_vm7, %v443_v18, %v439_v17 }
 0x9c9   :  { %v447_v22 = vmul.f32 %v444_v20, %v389_v58 }
 0xa0e   :  { %v450_v19 = vpop.permute.xlu2 %449 }
 0xa0f   :  { %v452_v21 = vmul.f32 %v450_v19, %v444_v20 }
 0xa11   :  { %454 = vrot.lane.b32.xlu0 %v452_v21, %s892_s18 }
 0xa83   :  { %v455_v23 = vpop.permute.xlu0 %454 }
 0xa84   :  { %v1058_v24 = vadd.f32 %v455_v23, %v447_v22 }
 0xa86   :  { %864 = vtanh.f32 %v1058_v24 }
 0xa8c   :  { %v865_v25 = vpop.eup %864 }
 0xa8d   :  { %460 = vrot.lane.b32.xlu1 %v865_v25, %s891_s17 }
 0xaff   :  { %v461_v26 = vpop.permute.xlu1 %460 }
 0xb00   :  { %v463_v27 = vmul.f32 %v461_v26, %v444_v20 }
 0xb02   :  { %465 = vrot.lane.b32.xlu2 %v463_v27, %s892_s18 }
 0xb5c   :  { %v466_v33 = vpop.permute.xlu2 %465 }
 0xb5d   :  { %469 = vst.msk [vmem:[#allocation3 + $0x20] sm:$0xff] %vm29_vm0, %v466_v33  ;;  %800 = vmatmul.msk.f32.vlgmr.msrb.gmra.mxu3 %vm29_vm0, %v466_v33 }
 0xb64   :  { %v684_v34 = vld [vmem:[#allocation3 + $0x20] sm:$0xff] }
 0xb65   :  { %810 = vmatmul.msk.f32.vlgmr.msra.gmra.mxu3 %vm29_vm0, %v684_v34 }
 0xbe0   :  { %v491_v37 = vpop.f32.mrf.mxu3 }
 0xbe1   :  { %v494_v38 = vadd.f32 %v491_v37, %v104_v36 }
 0xbe3   :  { %866 = vtanh.f32 %v494_v38  ;;  %v801_v43 = vmul.f32 -1.442695, %v494_v38 }
 0xbe5   :  { %868 = vpow2.f32 %v801_v43 }
 0xbe8   :  { %v749_v40 = vpop.f32.mrf.mxu3 }
 0xbe9   :  { %v867_v41 = vpop.eup %866  ;;  %v750_v42 = vadd.f32 %v1086_v39, %v749_v40 }
 0xbea   :  { %517 = vrot.lane.b32.xlu0 %v867_v41, %s891_s17 }
 0xbeb   :  { %766 = vst.msk [vmem:[%s1176_s6 + $0x20] sm:$0xff] %vm761_vm8, %v750_v42  ;;  %v869_v44 = vpop.eup %868 }
 0xbec   :  { %v498_v45 = vadd.f32 1.0, %v869_v44 }
 0xbee   :  { %870 = vrcp.f32 %v498_v45  ;;  %v510_v51 = vand.u32 2147483648, %v498_v45  ;;  %vm504_vm10 = vweird.f32 %v498_v45  ;;  %v508_v52 = vand.u32 2147483647, %v498_v45 }
 0xbf0   :  { %v511_v54 = vor.u32 1.1754944e-38, %v510_v51  ;;  %vm509_vm12 = vcmp.eq.f32.partialorder %v508_v52, 8.507059e+37 }
 0xbf4   :  { %v871_v46 = vpop.eup %870 }
 0xbf5   :  { %v500_v47 = vmul.f32 %v871_v46, %v498_v45  ;;  %vm505_vm9 = vweird.f32 %v871_v46 }
 0xbf6   :  { %vm506_vm11 = vmor %vm504_vm10, %vm505_vm9 }
 0xbf7   :  { %v501_v48 = vsub.f32 1.0, %v500_v47 }
 0xbf9   :  { %v502_v49 = vmul.f32 %v871_v46, %v501_v48  ;;  %v110_v48 = vadd.f32 %v1004_v12, %v999_v10 }
 0xbfb   :  { %v503_v50 = vadd.f32 %v871_v46, %v502_v49 }
 0xbfd   :  { %v507_v53 = vsel %vm506_vm11, %v871_v46, %v503_v50 }
 0xbfe   :  { %v512_v56 = vsel %vm509_vm12, %v511_v54, %v507_v53 }
 0xbff   :  { %v515_v58 = vmul.f32 %v512_v56, %v1058_v24 }
 0xc5c   :  { %v518_v55 = vpop.permute.xlu0 %517 }
 0xc5d   :  { %v520_v57 = vmul.f32 %v518_v55, %v512_v56 }
 0xc5f   :  { %522 = vrot.lane.b32.xlu1 %v520_v57, %s892_s18 }
 0xcd1   :  { %v523_v59 = vpop.permute.xlu1 %522 }
 0xcd2   :  { %v1096_v60 = vadd.f32 %v523_v59, %v515_v58 }
 0xcd4   :  { %872 = vtanh.f32 %v1096_v60 }
 0xcda   :  { %v873_v61 = vpop.eup %872 }
 0xcdb   :  { %528 = vrot.lane.b32.xlu2 %v873_v61, %s891_s17 }
 0xd35   :  { %v529_v63 = vpop.permute.xlu2 %528 }
 0xd36   :  { %v531_v0 = vmul.f32 %v529_v63, %v512_v56 }
 0xd38   :  { %533 = vrot.lane.b32.xlu0 %v531_v0, %s892_s18 }
 0xdaa   :  { %v534_v1 = vpop.permute.xlu0 %533 }
 0xdab   :  { %537 = vst.msk [vmem:[#allocation3 + $0x28] sm:$0xff] %vm29_vm0, %v534_v1  ;;  %802 = vmatmul.msk.f32.vlgmr.msrb.gmra.mxu1 %vm29_vm0, %v534_v1 }
 0xdb2   :  { %v685_v3 = vld [vmem:[#allocation3 + $0x28] sm:$0xff] }
 0xdb3   :  { %806 = vmatmul.msk.f32.vlgmr.msra.gmra.mxu1 %vm29_vm0, %v680_v2  ;;  %811 = vmatmul.msk.f32.gmra.mxu3 %vm29_vm0, %v685_v3 }
 0xdbb   :  { %807 = vmatmul.msk.f32.gmra.mxu1 %vm29_vm0, %v681_v4 }
 0xdc3   :  { %808 = vmatmul.msk.f32.gmra.mxu1 %vm29_vm0, %v682_v5 }
 0xdcb   :  { %809 = vmatmul.msk.f32.gmra.mxu1 %vm29_vm0, %v683_v6 }
 0xe28   :  { %v559_v9 = vpop.f32.mrf.mxu1 }
 0xe29   :  { %v562_v11 = vadd.f32 %v559_v9, %v107_v8 }
 0xe2b   :  { %874 = vtanh.f32 %v562_v11  ;;  %v803_v24 = vmul.f32 -1.442695, %v562_v11 }
 0xe2d   :  { %876 = vpow2.f32 %v803_v24 }
 0xe30   :  { %v737_v13 = vpop.f32.mrf.mxu1 }
 0xe31   :  { %v875_v14 = vpop.eup %874  ;;  %v738_v15 = vadd.f32 %v1086_v39, %v737_v13 }
 0xe32   :  { %585 = vrot.lane.b32.xlu1 %v875_v14, %s891_s17 }
 0xe33   :  { %762 = vst.msk [vmem:[%s1176_s6] sm:$0xff] %vm761_vm8, %v738_v15  ;;  %v877_v25 = vpop.eup %876 }
 0xe34   :  { %v566_v26 = vadd.f32 1.0, %v877_v25 }
 0xe36   :  { %v752_v16 = vpop.f32.mrf.mxu3  ;;  %878 = vrcp.f32 %v566_v26  ;;  %v578_v32 = vand.u32 2147483648, %v566_v26  ;;  %vm572_vm13 = vweird.f32 %v566_v26  ;;  %v576_v33 = vand.u32 2147483647, %v566_v26 }
 0xe37   :  { %v753_v17 = vadd.f32 %v1086_v39, %v752_v16 }
 0xe38   :  { %v740_v18 = vpop.f32.mrf.mxu1  ;;  %v579_v35 = vor.u32 1.1754944e-38, %v578_v32  ;;  %vm577_vm15 = vcmp.eq.f32.partialorder %v576_v33, 8.507059e+37 }
 0xe39   :  { %767 = vst.msk [vmem:[%s1176_s6 + $0x28] sm:$0xff] %vm761_vm8, %v753_v17  ;;  %v741_v19 = vadd.f32 %v1086_v39, %v740_v18 }
 0xe3b   :  { %763 = vst.msk [vmem:[%s1176_s6 + $0x8] sm:$0xff] %vm761_vm8, %v741_v19 }
 0xe3c   :  { %v879_v27 = vpop.eup %878 }
 0xe3d   :  { %v568_v28 = vmul.f32 %v879_v27, %v566_v26  ;;  %vm573_vm1 = vweird.f32 %v879_v27 }
 0xe3e   :  { %vm574_vm14 = vmor %vm572_vm13, %vm573_vm1 }
 0xe3f   :  { %v569_v29 = vsub.f32 1.0, %v568_v28 }
 0xe40   :  { %v743_v20 = vpop.f32.mrf.mxu1 }
 0xe41   :  { %v744_v21 = vadd.f32 %v1086_v39, %v743_v20  ;;  %v570_v30 = vmul.f32 %v879_v27, %v569_v29 }
 0xe43   :  { %764 = vst.msk [vmem:[%s1176_s6 + $0x10] sm:$0xff] %vm761_vm8, %v744_v21  ;;  %v571_v31 = vadd.f32 %v879_v27, %v570_v30 }
 0xe45   :  { %v575_v34 = vsel %vm574_vm14, %v879_v27, %v571_v31 }
 0xe46   :  { %v580_v37 = vsel %vm577_vm15, %v579_v35, %v575_v34 }
 0xe47   :  { %v583_v40 = vmul.f32 %v580_v37, %v1096_v60 }
 0xe48   :  { %v746_v22 = vpop.f32.mrf.mxu1 }
 0xe49   :  { %v747_v23 = vadd.f32 %v1086_v39, %v746_v22 }
 0xe4b   :  { %765 = vst.msk [vmem:[%s1176_s6 + $0x18] sm:$0xff] %vm761_vm8, %v747_v23 }
 0xea4   :  { %v586_v36 = vpop.permute.xlu1 %585 }
 0xea5   :  { %v588_v38 = vmul.f32 %v586_v36, %v580_v37 }
 0xea7   :  { %590 = vrot.lane.b32.xlu2 %v588_v38, %s892_s18 }
 0xf01   :  { %v591_v41 = vpop.permute.xlu2 %590 }
 0xf02   :  { %v593_v42 = vadd.f32 %v591_v41, %v583_v40 }
 0xf04   :  { %880 = vtanh.f32 %v593_v42 }
 0xf0a   :  { %v881_v43 = vpop.eup %880 }
 0xf0b   :  { %596 = vrot.lane.b32.xlu0 %v881_v43, %s891_s17 }
 0xf7d   :  { %v597_v44 = vpop.permute.xlu0 %596 }
 0xf7e   :  { %v599_v45 = vmul.f32 %v597_v44, %v580_v37 }
 0xf80   :  { %601 = vrot.lane.b32.xlu1 %v599_v45, %s892_s18 }
 0xff2   :  { %v602_v46 = vpop.permute.xlu1 %601 }
 0xff3   :  { %605 = vst.msk [vmem:[#allocation3 + $0x30] sm:$0xff] %vm29_vm0, %v602_v46  ;;  %804 = vmatmul.msk.f32.vlgmr.msra.gmra.mxu2 %vm29_vm0, %v602_v46 }
 0xffa   :  { %v686_v47 = vld [vmem:[#allocation3 + $0x30] sm:$0xff] }
 0xffb   :  { %812 = vmatmul.msk.f32.gmra.mxu3 %vm29_vm0, %v686_v47 }
0x1076   :  { %v627_v49 = vpop.f32.mrf.mxu2 }
0x1077   :  { %v630_v50 = vadd.f32 %v627_v49, %v110_v48 }
0x1079   :  { %882 = vtanh.f32 %v630_v50  ;;  %v805_v54 = vmul.f32 -1.442695, %v630_v50 }
0x107b   :  { %884 = vpow2.f32 %v805_v54 }
0x107e   :  { %v755_v51 = vpop.f32.mrf.mxu3 }
0x107f   :  { %v883_v52 = vpop.eup %882  ;;  %v756_v53 = vadd.f32 %v1086_v39, %v755_v51 }
0x1080   :  { %653 = vrot.lane.b32.xlu2 %v883_v52, %s891_s17 }
0x1081   :  { %768 = vst.msk [vmem:[%s1176_s6 + $0x30] sm:$0xff] %vm761_vm8, %v756_v53  ;;  %v885_v55 = vpop.eup %884 }
0x1082   :  { %v634_v56 = vadd.f32 1.0, %v885_v55 }
0x1084   :  { %886 = vrcp.f32 %v634_v56  ;;  %v646_v60 = vand.u32 2147483648, %v634_v56  ;;  %vm640_vm3 = vweird.f32 %v634_v56  ;;  %v644_v61 = vand.u32 2147483647, %v634_v56 }
0x1086   :  { %v647_v63 = vor.u32 1.1754944e-38, %v646_v60  ;;  %vm645_vm5 = vcmp.eq.f32.partialorder %v644_v61, 8.507059e+37 }
0x108a   :  { %v887_v10 = vpop.eup %886 }
0x108b   :  { %v636_v12 = vmul.f32 %v887_v10, %v634_v56  ;;  %vm641_vm2 = vweird.f32 %v887_v10 }
0x108c   :  { %vm642_vm4 = vmor %vm640_vm3, %vm641_vm2 }
0x108d   :  { %v637_v57 = vsub.f32 1.0, %v636_v12 }
0x108f   :  { %v638_v58 = vmul.f32 %v887_v10, %v637_v57 }
0x1091   :  { %v639_v59 = vadd.f32 %v887_v10, %v638_v58 }
0x1093   :  { %v643_v62 = vsel %vm642_vm4, %v887_v10, %v639_v59 }
0x1094   :  { %v648_v1 = vsel %vm645_vm5, %v647_v63, %v643_v62 }
0x1095   :  { %v651_v3 = vmul.f32 %v648_v1, %v593_v42 }
0x10da   :  { %v654_v0 = vpop.permute.xlu2 %653 }
0x10db   :  { %v656_v2 = vmul.f32 %v654_v0, %v648_v1 }
0x10dd   :  { %658 = vrot.lane.b32.xlu0 %v656_v2, %s892_s18 }
0x114f   :  { %v659_v4 = vpop.permute.xlu0 %658 }
0x1150   :  { %v661_v5 = vadd.f32 %v659_v4, %v651_v3 }
0x1152   :  { %888 = vtanh.f32 %v661_v5  ;;  %676 = vrot.lane.b32.xlu0 %v661_v5, %s893_s27 }
0x1158   :  { %v889_v6 = vpop.eup %888 }
0x1159   :  { %664 = vrot.lane.b32.xlu1 %v889_v6, %s891_s17 }
0x11c4   :  { %v677_v7 = vpop.permute.xlu0 %676 }
0x11c5   :  { %679 = vst.msk [vmem:[#allocation5] sm:$0xff] %vm29_vm0, %v677_v7 }
0x11cb   :  { %v665_v8 = vpop.permute.xlu1 %664 }
0x11cc   :  { %v667_v9 = vmul.f32 %v665_v8, %v648_v1 }
0x11ce   :  { %669 = vrot.lane.b32.xlu2 %v667_v9, %s892_s18 }
0x1228   :  { %v670_v11 = vpop.permute.xlu2 %669 }
0x1229   :  { %673 = vst.msk [vmem:[#allocation3 + $0x38] sm:$0xff] %vm29_vm0, %v670_v11 }
0x122a   :  { %674 = vst.msk [vmem:[#allocation4] sm:$0xff] %vm29_vm0, %v670_v11 }
0x122b   :  { %773 = vst.msk [vmem:[%s1177_s7] sm:$0xff] %vm29_vm0, %v670_v11 }
0x1230   :  { %v687_v13 = vld [vmem:[#allocation3 + $0x38] sm:$0xff] }
0x1231   :  { %813 = vmatmul.msk.f32.gmra.mxu3 %vm29_vm0, %v687_v13 }
0x12b4   :  { %v758_v14 = vpop.f32.mrf.mxu3 }
0x12b5   :  { %v759_v15 = vadd.f32 %v1086_v39, %v758_v14 }
0x12b7   :  { %769 = vst.msk [vmem:[%s1176_s6 + $0x38] sm:$0xff] %vm761_vm8, %v759_v15 }

</bundles_post_ra>
